<compile_context>
chip_gen: v5e
topology: v5e:2x2
jax: 0.10.0
libtpu: 0.0.40
codegen_flags: <defaults>
</compile_context>

<pallas_src>
import functools

import numpy as np
import jax
import jax.numpy as jnp
from jax.experimental import pallas as pl
from jax.experimental.pallas import tpu as pltpu


def _round_up(x, m):
    return ((x + m - 1) // m) * m


# ----------------------------- constants (NumPy, cached) ---------------------------

@functools.lru_cache(maxsize=None)
def _raw_constants(sample_rate, n_fft, n_mels):
    """Hann window (periodic), onesided DFT cos/sin matrices, HTK mel fbanks (norm=None)."""
    n_freqs = n_fft // 2 + 1
    n = np.arange(n_fft, dtype=np.float64)
    k = np.arange(n_freqs, dtype=np.float64)
    window = 0.5 * (1.0 - np.cos(2.0 * np.pi * n / n_fft))            # periodic hann
    ang = 2.0 * np.pi * np.outer(n, k) / float(n_fft)
    cos_m = np.cos(ang)                                               # (n_fft, n_freqs)
    sin_m = -np.sin(ang)                                              # (n_fft, n_freqs)

    # torchaudio.functional.melscale_fbanks(mel_scale="htk", norm=None)
    def hz_to_mel(f):
        return 2595.0 * np.log10(1.0 + f / 700.0)

    def mel_to_hz(m):
        return 700.0 * (10.0 ** (m / 2595.0) - 1.0)

    f_min, f_max = 0.0, sample_rate / 2.0
    all_freqs = np.linspace(0.0, sample_rate // 2, n_freqs)
    m_pts = np.linspace(hz_to_mel(f_min), hz_to_mel(f_max), n_mels + 2)
    f_pts = mel_to_hz(m_pts)
    f_diff = f_pts[1:] - f_pts[:-1]
    slopes = f_pts[None, :] - all_freqs[:, None]
    down = (-slopes[:, :-2]) / f_diff[:-1]
    up = slopes[:, 2:] / f_diff[1:]
    fb = np.maximum(0.0, np.minimum(down, up))                        # (n_freqs, n_mels)
    return window, cos_m, sin_m, fb


@functools.lru_cache(maxsize=None)
def _packed_constants(sample_rate, n_fft, n_mels):
    """Window-folded combined DFT matrix and stacked mel filterbank, bf16, 128-lane tiles."""
    n_freqs = n_fft // 2 + 1
    n_freq_pad = _round_up(n_freqs, 128)           # 201 -> 256
    n_mels_pad = _round_up(max(n_mels, 128), 128)  # 64 -> 128 (lane-dense output)

    window, cos_m, sin_m, fb = _raw_constants(sample_rate, n_fft, n_mels)
    cos_w = window[:, None] * cos_m
    sin_w = window[:, None] * sin_m

    # Combined DFT matrix: columns [re | im], each half padded to n_freq_pad.
    # Rows are NOT padded (K = n_fft = 400); block dim == full dim is legal.
    cs = np.zeros((n_fft, 2 * n_freq_pad), dtype=np.float64)
    cs[:, :n_freqs] = cos_w
    cs[:, n_freq_pad:n_freq_pad + n_freqs] = sin_w

    # Stacked filterbank so that (Z*Z) @ FB2 == re^2 @ fb + im^2 @ fb.
    fb2 = np.zeros((2 * n_freq_pad, n_mels_pad), dtype=np.float64)
    fb2[:n_freqs, :n_mels] = fb
    fb2[n_freq_pad:n_freq_pad + n_freqs, :n_mels] = fb

    # bf16 operands feed the MXU natively; accumulation stays f32 in the kernel.
    return (jnp.asarray(cs, dtype=jnp.bfloat16), jnp.asarray(fb2, dtype=jnp.bfloat16))


def _pick_tile(n_frames):
    """Frame-tile rows: <=1024, multiple of 256 when large, >=4 grid steps when possible."""
    full = _round_up(n_frames, 8)
    target = _round_up(-(-n_frames // 4), 256)     # cdiv(n_frames, 4) rounded to 256
    return max(8, min(1024, target, full))


# --------------------------------- Pallas kernel -----------------------------------

def _melspec_kernel(frames_ref, cs_ref, fb_ref, out_ref):
    # MXU matmul #1 (bf16 x bf16 -> f32): full onesided windowed DFT, [re | im] columns.
    z = jnp.dot(frames_ref[...], cs_ref[...], preferred_element_type=jnp.float32)
    # z*z (f32, VPU) holds re^2 and im^2; cast only at the dot input so the second
    # matmul also runs at bf16 MXU rate while the elementwise path stays f32.
    p = (z * z).astype(jnp.bfloat16)
    mel = jnp.dot(p, fb_ref[...], preferred_element_type=jnp.float32)
    # TODO(synk): PyTorch injects an arbitrary `normalizer` callable; fixed here to log(x + 1e-6).
    out_ref[...] = jnp.log(mel + 1e-6)


def melspec_transform_nodb(waveform, *, sample_rate=16000, n_fft=400, n_mels=64):
    """waveform: (1, T) or (T,) float32  ->  (n_frames, n_mels) float32 (== time, n_mels)."""
    hop = n_fft // 2
    n_freqs = n_fft // 2 + 1
    n_freq_pad = _round_up(n_freqs, 128)
    n_mels_pad = _round_up(max(n_mels, 128), 128)

    wav = jnp.reshape(waveform, (-1,)).astype(jnp.float32)
    T = wav.shape[0]
    n_frames = 1 + T // hop

    # center=True, pad_mode="reflect" (torch.stft defaults used by torchaudio MelSpectrogram).
    # Note: reflect padding requires T >= n_fft//2 + 1 samples (same constraint as torch).
    pad = n_fft // 2
    padded = jnp.pad(wav, (pad, pad), mode="reflect")

    # Frame without an XLA gather: non-overlapping hop rows + concat with the successor row
    # (hop == n_fft // 2, so frame t == [hops[t], hops[t+1]]).
    # TODO(synk): frames could be assembled in-kernel from a pl.ANY hops ref to avoid the
    # 2x sample duplication in HBM; kept in XLA (Option B) for simplicity.
    need = (n_frames + 1) * hop
    if padded.shape[0] < need:
        padded = jnp.pad(padded, (0, need - padded.shape[0]))
    hops = padded[:need].reshape(n_frames + 1, hop)
    frames = jnp.concatenate([hops[:-1], hops[1:]], axis=1)           # (n_frames, n_fft)

    # bf16 MXU operand; rows padded to the tile multiple, lanes left at n_fft (=400).
    frames = frames.astype(jnp.bfloat16)
    tile_t = _pick_tile(n_frames)
    n_frames_pad = _round_up(n_frames, tile_t)
    frames = jnp.pad(frames, ((0, n_frames_pad - n_frames), (0, 0)))

    cs, fb2 = _packed_constants(sample_rate, n_fft, n_mels)

    # Advisory cost so XLA overlaps the framing ops / output slice with the custom call.
    cost = pl.CostEstimate(
        flops=2 * n_frames_pad * (n_fft * 2 * n_freq_pad + 2 * n_freq_pad * n_mels_pad),
        transcendentals=n_frames_pad * n_mels_pad,
        bytes_accessed=(n_frames_pad * n_fft * 2
                        + n_fft * 2 * n_freq_pad * 2
                        + 2 * n_freq_pad * n_mels_pad * 2
                        + n_frames_pad * n_mels_pad * 4),
    )

    out = pl.pallas_call(
        _melspec_kernel,
        out_shape=jax.ShapeDtypeStruct((n_frames_pad, n_mels_pad), jnp.float32),
        grid=(n_frames_pad // tile_t,),
        in_specs=[
            pl.BlockSpec((tile_t, n_fft), lambda i: (i, 0)),
            # Constant block index -> fetched once, resident across all grid steps.
            pl.BlockSpec((n_fft, 2 * n_freq_pad), lambda i: (0, 0)),
            pl.BlockSpec((2 * n_freq_pad, n_mels_pad), lambda i: (0, 0)),
        ],
        out_specs=pl.BlockSpec((tile_t, n_mels_pad), lambda i: (i, 0)),
        compiler_params=pltpu.CompilerParams(
            dimension_semantics=("parallel",),
        ),
        cost_estimate=cost,
    )(frames, cs, fb2)
    return out[:n_frames, :n_mels]


# ------------------------------- pure-JAX reference --------------------------------

def melspec_reference(waveform, *, sample_rate=16000, n_fft=400, n_mels=64):
    """Unfused f32 reference: explicit window multiply, separate cos/sin matmuls, no padding."""
    hop = n_fft // 2
    wav = jnp.reshape(waveform, (-1,)).astype(jnp.float32)
    pad = n_fft // 2
    padded = jnp.pad(wav, (pad, pad), mode="reflect")
    n_frames = 1 + wav.shape[0] // hop
    idx = jnp.arange(n_frames)[:, None] * hop + jnp.arange(n_fft)[None, :]
    frames = padded[idx]

    window, cos_m, sin_m, fb = _raw_constants(sample_rate, n_fft, n_mels)
    window = jnp.asarray(window, jnp.float32)
    cos_m = jnp.asarray(cos_m, jnp.float32)
    sin_m = jnp.asarray(sin_m, jnp.float32)
    fb = jnp.asarray(fb, jnp.float32)

    xw = frames * window[None, :]
    power = (xw @ cos_m) ** 2 + (xw @ sin_m) ** 2
    return jnp.log(power @ fb + 1e-6)


if __name__ == "__main__":
    key = jax.random.PRNGKey(0)
    T = 1600                       # -> 9 STFT frames with n_fft=400, hop=200
    waveform = jax.random.normal(key, (1, T), dtype=jnp.float32)

    out = melspec_transform_nodb(waveform, sample_rate=16000, n_fft=400, n_mels=64)
    out = jax.block_until_ready(out)

    ref = melspec_reference(waveform, sample_rate=16000, n_fft=400, n_mels=64)
    assert out.shape == (1 + T // 200, 64), out.shape
    # bf16 MXU operands with f32 accumulation: log-mel matches the f32 reference to a few
    # 1e-2 (the log amplifies relative error on rare low-energy bins), hence the tolerance.
    max_err = float(jnp.max(jnp.abs(out - ref)))
    assert jnp.allclose(out, ref, atol=1.5e-1, rtol=2e-2), max_err

    print("KERNEL_OK")
</pallas_src>

<mosaic_0001>
module attributes {stable_mosaic.version = 11 : i64} {
  func.func @_melspec_kernel(%arg0: i32, %arg1: memref<16x400xbf16, #tpu.memory_space<vmem>>, %arg2: memref<400x512xbf16, #tpu.memory_space<vmem>>, %arg3: memref<512x128xbf16, #tpu.memory_space<vmem>>, %arg4: memref<16x128xf32, #tpu.memory_space<vmem>>) attributes {dimension_semantics = [#tpu.dimension_semantics<parallel>], iteration_bounds = array<i64: 1>, scalar_prefetch = 0 : i64, scratch_operands = 0 : i64, tpu.core_type = #tpu.core_type<tc>, window_params = [{transform_indices = @transform_0, window_bounds = array<i64: 16, 400>}, {pipeline_mode = #tpu.pipeline_mode<synchronous>, transform_indices = @transform_1, window_bounds = array<i64: 400, 512>}, {pipeline_mode = #tpu.pipeline_mode<synchronous>, transform_indices = @transform_2, window_bounds = array<i64: 512, 128>}, {transform_indices = @transform_3, window_bounds = array<i64: 16, 128>}]} {
    %c0 = arith.constant 0 : index
    %c0_0 = arith.constant 0 : index
    %0 = vector.load %arg1[%c0, %c0_0] : memref<16x400xbf16, #tpu.memory_space<vmem>>, vector<16x400xbf16>
    %c0_1 = arith.constant 0 : index
    %c0_2 = arith.constant 0 : index
    %1 = vector.load %arg2[%c0_1, %c0_2] : memref<400x512xbf16, #tpu.memory_space<vmem>>, vector<400x512xbf16>
    %cst = arith.constant dense<0.000000e+00> : vector<16x512xf32>
    %2 = tpu.matmul %0, %1, %cst {dimension_numbers = #tpu.dot_dimension_numbers<[1], [0], [0], [1], [0, 0, 1, 1], [], []>} : vector<16x400xbf16>, vector<400x512xbf16>, vector<16x512xf32> -> vector<16x512xf32>
    %3 = arith.mulf %2, %2 : vector<16x512xf32>
    %4 = arith.truncf %3 : vector<16x512xf32> to vector<16x512xbf16>
    %c0_3 = arith.constant 0 : index
    %c0_4 = arith.constant 0 : index
    %5 = vector.load %arg3[%c0_3, %c0_4] : memref<512x128xbf16, #tpu.memory_space<vmem>>, vector<512x128xbf16>
    %cst_5 = arith.constant dense<0.000000e+00> : vector<16x128xf32>
    %6 = tpu.matmul %4, %5, %cst_5 {dimension_numbers = #tpu.dot_dimension_numbers<[1], [0], [0], [1], [0, 0, 1, 1], [], []>} : vector<16x512xbf16>, vector<512x128xbf16>, vector<16x128xf32> -> vector<16x128xf32>
    %cst_6 = arith.constant 9.99999997E-7 : f32
    %7 = vector.broadcast %cst_6 : f32 to vector<16x128xf32>
    %8 = arith.addf %6, %7 : vector<16x128xf32>
    %9 = math.log %8 : vector<16x128xf32>
    %c0_7 = arith.constant 0 : index
    %c0_8 = arith.constant 0 : index
    %10 = vector.load %arg4[%c0_7, %c0_8] : memref<16x128xf32, #tpu.memory_space<vmem>>, vector<16x128xf32>
    tpu.vector_store %arg4[%c0_7, %c0_8], %9 {strides = array<i32>} : memref<16x128xf32, #tpu.memory_space<vmem>>, vector<16x128xf32>,
    return
  }
  func.func @transform_0(%arg0: i32) -> (i32, i32) {
    %c0_i32 = arith.constant 0 : i32
    %c0_i32_0 = arith.constant 0 : i32
    return %arg0, %c0_i32 : i32, i32
  }
  func.func @transform_1(%arg0: i32) -> (i32, i32) {
    %c0_i32 = arith.constant 0 : i32
    %c0_i32_0 = arith.constant 0 : i32
    %c0_i32_1 = arith.constant 0 : i32
    return %c0_i32, %c0_i32_0 : i32, i32
  }
  func.func @transform_2(%arg0: i32) -> (i32, i32) {
    %c0_i32 = arith.constant 0 : i32
    %c0_i32_0 = arith.constant 0 : i32
    %c0_i32_1 = arith.constant 0 : i32
    return %c0_i32, %c0_i32_0 : i32, i32
  }
  func.func @transform_3(%arg0: i32) -> (i32, i32) {
    %c0_i32 = arith.constant 0 : i32
    %c0_i32_0 = arith.constant 0 : i32
    return %arg0, %c0_i32 : i32, i32
  }
}

</mosaic_0001>

<bundles_post_ra>
// kernel: tpu_custom_call.1
= control target key start
LH: loop header
LB: loop body
LE: loop exit
PB: predicated region body
PF: predicated region fallthrough
CT: control target
= control target key end

     0   :  { %8 = vsyncpa [#allocation3], 0  ;;  %s2134_s0 = inlined_call_operand.hbm [shape: bf16[16,400], index: 0, kind: input, shape index: {}]   ;;  %s2135_s1 = inlined_call_operand.hbm [shape: bf16[400,512], index: 1, kind: input, shape index: {}]   ;;  %s2136_s2 = inlined_call_operand.hbm [shape: bf16[512,128], index: 2, kind: input, shape index: {}]   ;;  %s2137_s3 = inlined_call_operand.hbm [shape: f32[16,128], index: 3, kind: output, shape index: {}]  }
   0x1   :  { %9 = vsyncpa [#allocation6], 0 }
   0x2   :  { %10 = vsyncpa [#allocation4], 0  ;;  %s28_s14 = sshll.u32 %s2135_s1, 4  ;;  %s2064_s15 = smov [#allocation5]   ;;  %s29_s14 = int_to_ptr.hbm [resolvable:$true] %s28_s14 }
   0x3   :  { %s30_s16 = sshll.u32 %s2064_s15, 4  ;;  %s15_s19 = sshll.u32 %s2134_s0, 4  ;;  %s31_s16 = int_to_ptr.vmem [resolvable:$true] %s30_s16  ;;  %s16_s19 = int_to_ptr.hbm [resolvable:$true] %s15_s19 }
   0x4   :  { %s2065_s20 = smov 256   ;;  %s2066_s21 = smov 16  }
   0x5   :  { %36 = dma.hbm_to_vmem [thread:$0]  %s29_s14, 12800, %s31_s16, [#allocation6], %s2065_s20, %s2065_s20, %s2066_s21  }
   0x6   :  { %s2067_s22 = smov [#allocation2]   ;;  %s41_s26 = sshll.u32 %s2136_s2, 4  ;;  %s42_s26 = int_to_ptr.hbm [resolvable:$true] %s41_s26 }
   0x7   :  { %s17_s23 = sshll.u32 %s2067_s22, 4  ;;  %s2068_s1 = smov [#allocation7]   ;;  %s18_s23 = int_to_ptr.vmem [resolvable:$true] %s17_s23 }
   0x8   :  { %23 = dma.hbm_to_vmem [thread:$0]  %s16_s19, 512, %s18_s23, [#allocation3], %s2065_s20, %s2065_s20, %s2066_s21  }
   0x9   :  { %s43_s27 = sshll.u32 %s2068_s1, 4  ;;  %s2069_s28 = smov 64   ;;  %s44_s27 = int_to_ptr.vmem [resolvable:$true] %s43_s27 }
   0xa   :  { %s2070_s29 = smov 4  }
   0xb   :  { %49 = dma.hbm_to_vmem [thread:$0]  %s42_s26, 4096, %s44_s27, [#allocation6], %s2069_s28, %s2069_s28, %s2070_s29  }
   0xc   :  { %2058 = dma.done.wait [#allocation3], 512  }
   0xd   :  { %2059 = vsyncadd [#allocation3], 4294966784 }
   0xe   :  { %2060 = dma.done.wait [#allocation6], 16896  }
   0xf   :  { %2061 = vsyncadd [#allocation6], 4294950400  ;;  %v1394_v0 = vld [vmem:[#allocation5 + $0xe0] sm:$0xf]  ;;  %v1846_v1 = vld [vmem:[#allocation5 + $0xec] sm:$0xf0] }
  0x10   :  { %v1650_v2 = vld [vmem:[#allocation5 + $0x2e0] sm:$0xf]  ;;  %v1395_v3 = vor.u32 %v1846_v1, %v1394_v0  ;;  %v1910_v4 = vld [vmem:[#allocation5 + $0x2ec] sm:$0xf0]  ;;  %v1844_v11 = vld [vmem:[#allocation5 + $0xe4] sm:$0xf] }
  0x11   :  { %v1666_v5 = vld [vmem:[#allocation5 + $0x300] sm:$0xf]  ;;  %v1914_v6 = vld [vmem:[#allocation5 + $0x30c] sm:$0xf0]  ;;  %v1651_v7 = vor.u32 %v1910_v4, %v1650_v2  ;;  %v1396_v13 = vld [vmem:[#allocation5 + $0xf0] sm:$0xf0] }
  0x12   :  { %v1667_v8 = vor.u32 %v1914_v6, %v1666_v5  ;;  %v1522_v9 = vld [vmem:[#allocation5 + $0x1e0] sm:$0xf]  ;;  %v1878_v10 = vld [vmem:[#allocation5 + $0x1ec] sm:$0xf0]  ;;  %690 = vmatpush.bf16.msra.mxu0 %v1395_v3  ;;  %v1399_v16 = vor.u32 %v1844_v11, %v1396_v13  ;;  %v1840_v23 = vld [vmem:[#allocation5 + $0xc4] sm:$0xf] }
  0x13   :  { %v1523_v12 = vor.u32 %v1878_v10, %v1522_v9  ;;  %v1378_v14 = vld [vmem:[#allocation5 + $0xc0] sm:$0xf]  ;;  %v1842_v15 = vld [vmem:[#allocation5 + $0xcc] sm:$0xf0]  ;;  %718 = vmatpush.bf16.msra.mxu2 %v1651_v7  ;;  %v1380_v24 = vld [vmem:[#allocation5 + $0xd0] sm:$0xf0] }
  0x14   :  { %739 = vmatpush.bf16.msra.mxu3 %v1667_v8  ;;  %v1379_v17 = vor.u32 %v1842_v15, %v1378_v14  ;;  %v1634_v18 = vld [vmem:[#allocation5 + $0x2c0] sm:$0xf]  ;;  %v1906_v19 = vld [vmem:[#allocation5 + $0x2cc] sm:$0xf0]  ;;  %v1383_v26 = vor.u32 %v1840_v23, %v1380_v24  ;;  %v1836_v35 = vld [vmem:[#allocation5 + $0xa4] sm:$0xf] }
  0x15   :  { %v1506_v20 = vld [vmem:[#allocation5 + $0x1c0] sm:$0xf]  ;;  %704 = vmatpush.bf16.msra.mxu1 %v1523_v12  ;;  %v1635_v21 = vor.u32 %v1906_v19, %v1634_v18  ;;  %v1874_v22 = vld [vmem:[#allocation5 + $0x1cc] sm:$0xf0]  ;;  %v1364_v36 = vld [vmem:[#allocation5 + $0xb0] sm:$0xf0] }
  0x16   :  { %v1507_v25 = vor.u32 %v1874_v22, %v1506_v20  ;;  %v1362_v27 = vld [vmem:[#allocation5 + $0xa0] sm:$0xf]  ;;  %v1838_v28 = vld [vmem:[#allocation5 + $0xac] sm:$0xf0]  ;;  %691 = vmatpush.bf16.msra.mxu0 %v1379_v17  ;;  %v1367_v42 = vor.u32 %v1836_v35, %v1364_v36  ;;  %v1832_v46 = vld [vmem:[#allocation5 + $0x84] sm:$0xf] }
  0x17   :  { %v1618_v29 = vld [vmem:[#allocation5 + $0x2a0] sm:$0xf]  ;;  %v1363_v30 = vor.u32 %v1838_v28, %v1362_v27  ;;  %v1902_v31 = vld [vmem:[#allocation5 + $0x2ac] sm:$0xf0]  ;;  %719 = vmatpush.bf16.msra.mxu2 %v1635_v21  ;;  %v1348_v47 = vld [vmem:[#allocation5 + $0x90] sm:$0xf0] }
  0x18   :  { %746 = vmatpush.bf16.msrb.mxu3 %v1399_v16  ;;  %v1490_v32 = vld [vmem:[#allocation5 + $0x1a0] sm:$0xf]  ;;  %v1870_v33 = vld [vmem:[#allocation5 + $0x1ac] sm:$0xf0]  ;;  %v1619_v34 = vor.u32 %v1902_v31, %v1618_v29  ;;  %v1351_v54 = vor.u32 %v1832_v46, %v1348_v47  ;;  %v1828_v58 = vld [vmem:[#allocation5 + $0x64] sm:$0xf] }
  0x19   :  { %v1346_v37 = vld [vmem:[#allocation5 + $0x80] sm:$0xf]  ;;  %705 = vmatpush.bf16.msra.mxu1 %v1507_v25  ;;  %v1491_v38 = vor.u32 %v1870_v33, %v1490_v32  ;;  %v1834_v39 = vld [vmem:[#allocation5 + $0x8c] sm:$0xf0]  ;;  %v1332_v59 = vld [vmem:[#allocation5 + $0x70] sm:$0xf0] }
  0x1a   :  { %v1602_v40 = vld [vmem:[#allocation5 + $0x280] sm:$0xf]  ;;  %v1898_v41 = vld [vmem:[#allocation5 + $0x28c] sm:$0xf0]  ;;  %692 = vmatpush.bf16.msra.mxu0 %v1363_v30  ;;  %v1347_v45 = vor.u32 %v1834_v39, %v1346_v37  ;;  %v1335_v2 = vor.u32 %v1828_v58, %v1332_v59  ;;  %v1824_v5 = vld [vmem:[#allocation5 + $0x44] sm:$0xf] }
  0x1b   :  { %v1474_v43 = vld [vmem:[#allocation5 + $0x180] sm:$0xf]  ;;  %v1866_v44 = vld [vmem:[#allocation5 + $0x18c] sm:$0xf0]  ;;  %720 = vmatpush.bf16.msra.mxu2 %v1619_v34  ;;  %v1603_v48 = vor.u32 %v1898_v41, %v1602_v40  ;;  %v1316_v7 = vld [vmem:[#allocation5 + $0x50] sm:$0xf0] }
  0x1c   :  { %747 = vmatpush.bf16.msrb.mxu3 %v1383_v26  ;;  %v1330_v49 = vld [vmem:[#allocation5 + $0x60] sm:$0xf]  ;;  %v1830_v50 = vld [vmem:[#allocation5 + $0x6c] sm:$0xf0]  ;;  %v1475_v51 = vor.u32 %v1866_v44, %v1474_v43  ;;  %v1813_v8 = vld [vmem:[#allocation2 + $0xc] sm:$0xf]  ;;  %v1319_v18 = vor.u32 %v1824_v5, %v1316_v7 }
  0x1d   :  { %706 = vmatpush.bf16.msra.mxu1 %v1491_v38  ;;  %v1586_v52 = vld [vmem:[#allocation5 + $0x260] sm:$0xf]  ;;  %v1894_v53 = vld [vmem:[#allocation5 + $0x26c] sm:$0xf0]  ;;  %v1331_v57 = vor.u32 %v1830_v50, %v1330_v49  ;;  %v1276_v9 = vld [vmem:[#allocation2 + $0x18] sm:$0xf0] }
  0x1e   :  { %v1458_v55 = vld [vmem:[#allocation5 + $0x160] sm:$0xf]  ;;  %v1862_v56 = vld [vmem:[#allocation5 + $0x16c] sm:$0xf0]  ;;  %693 = vmatpush.bf16.msra.mxu0 %v1347_v45  ;;  %v1587_v60 = vor.u32 %v1894_v53, %v1586_v52  ;;  %v2103_v13 = vor.u32 %v1813_v8, %v1276_v9  ;;  %vm686_vm0 = vcmask 130048   ;;  %s2071_s0 = smov [#allocation8]  }
  0x1f   :  { %721 = vmatpush.bf16.msra.mxu2 %v1603_v48  ;;  %v1314_v61 = vld [vmem:[#allocation5 + $0x40] sm:$0xf]  ;;  %v1826_v62 = vld [vmem:[#allocation5 + $0x4c] sm:$0xf0]  ;;  %v1459_v63 = vor.u32 %v1862_v56, %v1458_v55  ;;  %v1820_v20 = vld [vmem:[#allocation5 + $0x24] sm:$0xf] }
  0x20   :  { %748 = vmatpush.bf16.msrb.mxu3 %v1367_v42  ;;  %v1570_v0 = vld [vmem:[#allocation5 + $0x240] sm:$0xf]  ;;  %v1890_v1 = vld [vmem:[#allocation5 + $0x24c] sm:$0xf0]  ;;  %v1315_v6 = vor.u32 %v1826_v62, %v1314_v61  ;;  %v1300_v21 = vld [vmem:[#allocation5 + $0x30] sm:$0xf0] }
  0x21   :  { %707 = vmatpush.bf16.msra.mxu1 %v1475_v51  ;;  %v1442_v3 = vld [vmem:[#allocation5 + $0x140] sm:$0xf]  ;;  %v1858_v4 = vld [vmem:[#allocation5 + $0x14c] sm:$0xf0]  ;;  %v1571_v10 = vor.u32 %v1890_v1, %v1570_v0  ;;  %1680 = vmatmul.msk.bf16.vlgmr.msra.gmra.mxu3 %vm686_vm0, %v2103_v13  ;;  %v1816_v31 = vld [vmem:[#allocation5 + $0x4] sm:$0xf]  ;;  %v1303_v36 = vor.u32 %v1820_v20, %v1300_v21 }
  0x22   :  { %694 = vmatpush.bf16.msra.mxu0 %v1331_v57  ;;  %v1298_v11 = vld [vmem:[#allocation5 + $0x20] sm:$0xf]  ;;  %v1822_v12 = vld [vmem:[#allocation5 + $0x2c] sm:$0xf0]  ;;  %v1443_v14 = vor.u32 %v1858_v4, %v1442_v3  ;;  %v1284_v32 = vld [vmem:[#allocation5 + $0x10] sm:$0xf0] }
  0x23   :  { %722 = vmatpush.bf16.msra.mxu2 %v1587_v60  ;;  %v1554_v15 = vld [vmem:[#allocation5 + $0x220] sm:$0xf]  ;;  %v1886_v16 = vld [vmem:[#allocation5 + $0x22c] sm:$0xf0]  ;;  %v1299_v22 = vor.u32 %v1822_v12, %v1298_v11  ;;  %v1876_v33 = vld [vmem:[#allocation5 + $0x1e4] sm:$0xf] }
  0x24   :  { %749 = vmatpush.bf16.msrb.mxu3 %v1351_v54  ;;  %v1426_v17 = vld [vmem:[#allocation5 + $0x120] sm:$0xf]  ;;  %v1854_v19 = vld [vmem:[#allocation5 + $0x12c] sm:$0xf0]  ;;  %v1555_v26 = vor.u32 %v1886_v16, %v1554_v15  ;;  %v1524_v34 = vld [vmem:[#allocation5 + $0x1f0] sm:$0xf0]  ;;  %v1287_v54 = vor.u32 %v1816_v31, %v1284_v32 }
  0x25   :  { %708 = vmatpush.bf16.msra.mxu1 %v1459_v63  ;;  %v1282_v23 = vld [vmem:[#allocation5] sm:$0xf]  ;;  %v1818_v24 = vld [vmem:[#allocation5 + $0xc] sm:$0xf0]  ;;  %v1427_v30 = vor.u32 %v1854_v19, %v1426_v17  ;;  %v1908_v35 = vld [vmem:[#allocation5 + $0x2e4] sm:$0xf]  ;;  %v1527_v45 = vor.u32 %v1876_v33, %v1524_v34 }
  0x26   :  { %695 = vmatpush.bf16.msra.mxu0 %v1315_v6  ;;  %v1538_v25 = vld [vmem:[#allocation5 + $0x200] sm:$0xf]  ;;  %v1882_v27 = vld [vmem:[#allocation5 + $0x20c] sm:$0xf0]  ;;  %v1652_v37 = vld [vmem:[#allocation5 + $0x2f0] sm:$0xf0]  ;;  %v1283_v40 = vor.u32 %v1818_v24, %v1282_v23 }
  0x27   :  { %723 = vmatpush.bf16.msra.mxu2 %v1571_v10  ;;  %v1410_v28 = vld [vmem:[#allocation5 + $0x100] sm:$0xf]  ;;  %v1850_v29 = vld [vmem:[#allocation5 + $0x10c] sm:$0xf0]  ;;  %v1912_v38 = vld [vmem:[#allocation5 + $0x304] sm:$0xf]  ;;  %v1539_v44 = vor.u32 %v1882_v27, %v1538_v25  ;;  %v1655_v55 = vor.u32 %v1908_v35, %v1652_v37 }
  0x28   :  { %750 = vmatpush.bf16.msrb.mxu3 %v1335_v2  ;;  %v1668_v39 = vld [vmem:[#allocation5 + $0x310] sm:$0xf0]  ;;  %v1402_v41 = vld [vmem:[#allocation5 + $0xe8] sm:$0xf]  ;;  %v1847_v42 = vld [vmem:[#allocation5 + $0xf4] sm:$0xf0]  ;;  %v1411_v49 = vor.u32 %v1850_v29, %v1410_v28 }
  0x29   :  { %709 = vmatpush.bf16.msra.mxu1 %v1443_v14  ;;  %v1274_v43 = vld [vmem:[#allocation2 + $0x8] sm:$0xf]  ;;  %v1815_v46 = vld [vmem:[#allocation2 + $0x14] sm:$0xf0]  ;;  %v1671_v50 = vor.u32 %v1912_v38, %v1668_v39  ;;  %v1872_v51 = vld [vmem:[#allocation5 + $0x1c4] sm:$0xf]  ;;  %v1403_v59 = vor.u32 %v1847_v42, %v1402_v41 }
  0x2a   :  { %696 = vmatpush.bf16.msra.mxu0 %v1299_v22  ;;  %v1530_v47 = vld [vmem:[#allocation5 + $0x1e8] sm:$0xf]  ;;  %v1879_v48 = vld [vmem:[#allocation5 + $0x1f4] sm:$0xf0]  ;;  %v1508_v52 = vld [vmem:[#allocation5 + $0x1d0] sm:$0xf0]  ;;  %v2107_v60 = vor.u32 %v1815_v46, %v1274_v43 }
  0x2b   :  { %724 = vmatpush.bf16.msra.mxu2 %v1555_v26  ;;  %v1266_v53 = vld [vmem:[#allocation2] sm:$0xf]  ;;  %v1814_v56 = vld [vmem:[#allocation2 + $0xc] sm:$0xf0]  ;;  %v1812_v57 = vld [vmem:[#allocation2 + $0x4] sm:$0xf]  ;;  %v1531_v63 = vor.u32 %v1879_v48, %v1530_v47  ;;  %v1511_v0 = vor.u32 %v1872_v51, %v1508_v52 }
  0x2c   :  { %751 = vmatpush.bf16.msrb.mxu3 %v1319_v18  ;;  %v1268_v58 = vld [vmem:[#allocation2 + $0x10] sm:$0xf0]  ;;  %v1904_v61 = vld [vmem:[#allocation5 + $0x2c4] sm:$0xf]  ;;  %v1386_v1 = vld [vmem:[#allocation5 + $0xc8] sm:$0xf]  ;;  %v2109_v4 = vor.u32 %v1814_v56, %v1266_v53 }
  0x2d   :  { %710 = vmatpush.bf16.msra.mxu1 %v1427_v30  ;;  %v1636_v62 = vld [vmem:[#allocation5 + $0x2d0] sm:$0xf0]  ;;  %v1843_v2 = vld [vmem:[#allocation5 + $0xd4] sm:$0xf0]  ;;  %v1514_v3 = vld [vmem:[#allocation5 + $0x1c8] sm:$0xf]  ;;  %v2111_v5 = vor.u32 %v1812_v57, %v1268_v58 }
  0x2e   :  { %697 = vmatpush.bf16.msra.mxu0 %v1283_v40  ;;  %v1875_v6 = vld [vmem:[#allocation5 + $0x1d4] sm:$0xf0]  ;;  %v1868_v7 = vld [vmem:[#allocation5 + $0x1a4] sm:$0xf]  ;;  %v1492_v8 = vld [vmem:[#allocation5 + $0x1b0] sm:$0xf0]  ;;  %v1639_v9 = vor.u32 %v1904_v61, %v1636_v62  ;;  %v1387_v10 = vor.u32 %v1843_v2, %v1386_v1 }
  0x2f   :  { %725 = vmatpush.bf16.msra.mxu2 %v1539_v44  ;;  %v1900_v11 = vld [vmem:[#allocation5 + $0x2a4] sm:$0xf]  ;;  %v1620_v12 = vld [vmem:[#allocation5 + $0x2b0] sm:$0xf0]  ;;  %v1515_v14 = vor.u32 %v1875_v6, %v1514_v3  ;;  %v1495_v15 = vor.u32 %v1868_v7, %v1492_v8  ;;  %v1370_v16 = vld [vmem:[#allocation5 + $0xa8] sm:$0xf] }
  0x30   :  { %752 = vmatpush.bf16.msrb.mxu3 %v1303_v36  ;;  %v1839_v17 = vld [vmem:[#allocation5 + $0xb4] sm:$0xf0]  ;;  %v1498_v18 = vld [vmem:[#allocation5 + $0x1a8] sm:$0xf]  ;;  %v1864_v20 = vld [vmem:[#allocation5 + $0x184] sm:$0xf]  ;;  %v1623_v22 = vor.u32 %v1900_v11, %v1620_v12 }
  0x31   :  { %711 = vmatpush.bf16.msra.mxu1 %v1411_v49  ;;  %698 = vmatmul.bf16.vlgmr.msra.gmra.mxu0 %v2109_v4  ;;  %v1871_v19 = vld [vmem:[#allocation5 + $0x1b4] sm:$0xf0]  ;;  %v1476_v21 = vld [vmem:[#allocation5 + $0x190] sm:$0xf0]  ;;  %v1371_v23 = vor.u32 %v1839_v17, %v1370_v16  ;;  %v1896_v24 = vld [vmem:[#allocation5 + $0x284] sm:$0xf] }
  0x32   :  { %760 = vmatpush.bf16.msrb.mxu0 %v1527_v45  ;;  %726 = vmatmul.bf16.vlgmr.msra.gmra.mxu2 %v2107_v60  ;;  %v1604_v25 = vld [vmem:[#allocation5 + $0x290] sm:$0xf0]  ;;  %v1499_v26 = vor.u32 %v1871_v19, %v1498_v18  ;;  %v1479_v27 = vor.u32 %v1864_v20, %v1476_v21  ;;  %v1354_v28 = vld [vmem:[#allocation5 + $0x88] sm:$0xf]  ;;  %v1835_v29 = vld [vmem:[#allocation5 + $0x94] sm:$0xf0] }
  0x33   :  { %795 = vmatpush.bf16.msrb.mxu2 %v1671_v50  ;;  %v1482_v30 = vld [vmem:[#allocation5 + $0x188] sm:$0xf]  ;;  %v1867_v31 = vld [vmem:[#allocation5 + $0x194] sm:$0xf0]  ;;  %v1860_v32 = vld [vmem:[#allocation5 + $0x164] sm:$0xf]  ;;  %v1607_v34 = vor.u32 %v1896_v24, %v1604_v25  ;;  %v1355_v35 = vor.u32 %v1835_v29, %v1354_v28 }
  0x34   :  { %753 = vmatpush.bf16.msrb.mxu3 %v1287_v54  ;;  %712 = vmatmul.bf16.vlgmr.msra.gmra.mxu1 %v2111_v5  ;;  %v1460_v33 = vld [vmem:[#allocation5 + $0x170] sm:$0xf0]  ;;  %v1892_v36 = vld [vmem:[#allocation5 + $0x264] sm:$0xf]  ;;  %v1483_v38 = vor.u32 %v1867_v31, %v1482_v30  ;;  %v1338_v40 = vld [vmem:[#allocation5 + $0x68] sm:$0xf] }
  0x35   :  { %774 = vmatpush.bf16.msrb.mxu1 %v1655_v55  ;;  %v1588_v37 = vld [vmem:[#allocation5 + $0x270] sm:$0xf0]  ;;  %v1463_v39 = vor.u32 %v1860_v32, %v1460_v33  ;;  %v1831_v41 = vld [vmem:[#allocation5 + $0x74] sm:$0xf0]  ;;  %v1466_v42 = vld [vmem:[#allocation5 + $0x168] sm:$0xf] }
  0x36   :  { %761 = vmatpush.bf16.msrb.mxu0 %v1511_v0  ;;  %v1863_v43 = vld [vmem:[#allocation5 + $0x174] sm:$0xf0]  ;;  %v1856_v44 = vld [vmem:[#allocation5 + $0x144] sm:$0xf]  ;;  %v1444_v45 = vld [vmem:[#allocation5 + $0x150] sm:$0xf0]  ;;  %v1591_v46 = vor.u32 %v1892_v36, %v1588_v37  ;;  %v1339_v47 = vor.u32 %v1831_v41, %v1338_v40 }
  0x37   :  { %816 = vmatpush.bf16.msra.mxu2 %v1531_v63  ;;  %754 = vmatmul.bf16.vlgmr.msrb.gmra.mxu3 %v2109_v4  ;;  %v1888_v48 = vld [vmem:[#allocation5 + $0x244] sm:$0xf]  ;;  %v1572_v49 = vld [vmem:[#allocation5 + $0x250] sm:$0xf0]  ;;  %v1467_v50 = vor.u32 %v1863_v43, %v1466_v42  ;;  %v1447_v51 = vor.u32 %v1856_v44, %v1444_v45  ;;  %v1322_v52 = vld [vmem:[#allocation5 + $0x48] sm:$0xf] }
  0x38   :  { %802 = vmatpush.bf16.msra.mxu3 %v1403_v59  ;;  %v1827_v53 = vld [vmem:[#allocation5 + $0x54] sm:$0xf0]  ;;  %v1450_v54 = vld [vmem:[#allocation5 + $0x148] sm:$0xf]  ;;  %v1852_v56 = vld [vmem:[#allocation5 + $0x124] sm:$0xf]  ;;  %v1575_v58 = vor.u32 %v1888_v48, %v1572_v49 }
  0x39   :  { %775 = vmatpush.bf16.msrb.mxu1 %v1639_v9  ;;  %v1859_v55 = vld [vmem:[#allocation5 + $0x154] sm:$0xf0]  ;;  %v1428_v57 = vld [vmem:[#allocation5 + $0x130] sm:$0xf0]  ;;  %v1323_v59 = vor.u32 %v1827_v53, %v1322_v52  ;;  %v1884_v61 = vld [vmem:[#allocation5 + $0x224] sm:$0xf] }
  0x3a   :  { %762 = vmatpush.bf16.msrb.mxu0 %v1495_v15  ;;  %v1556_v62 = vld [vmem:[#allocation5 + $0x230] sm:$0xf0]  ;;  %v1451_v63 = vor.u32 %v1859_v55, %v1450_v54  ;;  %v1431_v0 = vor.u32 %v1852_v56, %v1428_v57  ;;  %v1306_v1 = vld [vmem:[#allocation5 + $0x28] sm:$0xf]  ;;  %v1823_v2 = vld [vmem:[#allocation5 + $0x34] sm:$0xf0] }
  0x3b   :  { %817 = vmatpush.bf16.msra.mxu2 %v1515_v14  ;;  %v1434_v3 = vld [vmem:[#allocation5 + $0x128] sm:$0xf]  ;;  %v1855_v6 = vld [vmem:[#allocation5 + $0x134] sm:$0xf0]  ;;  %v1848_v7 = vld [vmem:[#allocation5 + $0x104] sm:$0xf]  ;;  %v1559_v9 = vor.u32 %v1884_v61, %v1556_v62  ;;  %v1307_v12 = vor.u32 %v1823_v2, %v1306_v1 }
  0x3c   :  { %803 = vmatpush.bf16.msra.mxu3 %v1387_v10  ;;  %v1412_v8 = vld [vmem:[#allocation5 + $0x110] sm:$0xf0]  ;;  %v1658_v10 = vld [vmem:[#allocation5 + $0x2e8] sm:$0xf]  ;;  %v1911_v11 = vld [vmem:[#allocation5 + $0x2f4] sm:$0xf0]  ;;  %v1435_v16 = vor.u32 %v1855_v6, %v1434_v3 }
  0x3d   :  { %776 = vmatpush.bf16.msrb.mxu1 %v1623_v22  ;;  %v1880_v14 = vld [vmem:[#allocation5 + $0x204] sm:$0xf]  ;;  %v1540_v15 = vld [vmem:[#allocation5 + $0x210] sm:$0xf0]  ;;  %v1415_v17 = vor.u32 %v1848_v7, %v1412_v8  ;;  %v1290_v18 = vld [vmem:[#allocation5 + $0x8] sm:$0xf]  ;;  %v1659_v21 = vor.u32 %v1911_v11, %v1658_v10 }
  0x3e   :  { %763 = vmatpush.bf16.msrb.mxu0 %v1479_v27  ;;  %v1819_v19 = vld [vmem:[#allocation5 + $0x14] sm:$0xf0]  ;;  %v1845_v20 = vld [vmem:[#allocation5 + $0xec] sm:$0xf]  ;;  %v1404_v22 = vld [vmem:[#allocation5 + $0xf8] sm:$0xf0]  ;;  %v1543_v25 = vor.u32 %v1880_v14, %v1540_v15 }
  0x3f   :  { %818 = vmatpush.bf16.msra.mxu2 %v1499_v26  ;;  %v1851_v24 = vld [vmem:[#allocation5 + $0x114] sm:$0xf0]  ;;  %v1674_v26 = vld [vmem:[#allocation5 + $0x308] sm:$0xf]  ;;  %v1909_v27 = vld [vmem:[#allocation5 + $0x2ec] sm:$0xf]  ;;  %v1291_v29 = vor.u32 %v1819_v19, %v1290_v18  ;;  %v1407_v33 = vor.u32 %v1845_v20, %v1404_v22 }
  0x40   :  { %804 = vmatpush.bf16.msra.mxu3 %v1371_v23  ;;  %v1418_v23 = vld [vmem:[#allocation5 + $0x108] sm:$0xf]  ;;  %v1660_v28 = vld [vmem:[#allocation5 + $0x2f8] sm:$0xf0]  ;;  %v1915_v30 = vld [vmem:[#allocation5 + $0x314] sm:$0xf0] }
  0x41   :  { %777 = vmatpush.bf16.msrb.mxu1 %v1607_v34  ;;  %v1642_v31 = vld [vmem:[#allocation5 + $0x2c8] sm:$0xf]  ;;  %v1907_v32 = vld [vmem:[#allocation5 + $0x2d4] sm:$0xf0]  ;;  %v1419_v34 = vor.u32 %v1851_v24, %v1418_v23  ;;  %v1532_v36 = vld [vmem:[#allocation5 + $0x1f8] sm:$0xf0]  ;;  %v1663_v37 = vor.u32 %v1909_v27, %v1660_v28  ;;  %v1675_v40 = vor.u32 %v1915_v30, %v1674_v26 }
  0x42   :  { %764 = vmatpush.bf16.msrb.mxu0 %v1463_v39  ;;  %1681 = vmatmul.msk.bf16.vlgmr.msrb.gmra.mxu2 %vm686_vm0, %v2103_v13  ;;  %v1388_v39 = vld [vmem:[#allocation5 + $0xd8] sm:$0xf0]  ;;  %v1643_v41 = vor.u32 %v1907_v32, %v1642_v31  ;;  %v1905_v42 = vld [vmem:[#allocation5 + $0x2cc] sm:$0xf]  ;;  %v1626_v45 = vld [vmem:[#allocation5 + $0x2a8] sm:$0xf] }
  0x43   :  { %819 = vmatpush.bf16.msra.mxu2 %v1483_v38  ;;  %v1841_v38 = vld [vmem:[#allocation5 + $0xcc] sm:$0xf]  ;;  %v1644_v43 = vld [vmem:[#allocation5 + $0x2d8] sm:$0xf0]  ;;  %v1610_v57 = vld [vmem:[#allocation5 + $0x288] sm:$0xf] }
  0x44   :  { %805 = vmatpush.bf16.msra.mxu3 %v1355_v35  ;;  %v1877_v35 = vld [vmem:[#allocation5 + $0x1ec] sm:$0xf]  ;;  %v1516_v49 = vld [vmem:[#allocation5 + $0x1d8] sm:$0xf0]  ;;  %v1594_v8 = vld [vmem:[#allocation5 + $0x268] sm:$0xf] }
  0x45   :  { %778 = vmatpush.bf16.msrb.mxu1 %v1591_v46  ;;  %v1535_v44 = vor.u32 %v1877_v35, %v1532_v36  ;;  %v1903_v46 = vld [vmem:[#allocation5 + $0x2b4] sm:$0xf0]  ;;  %v1873_v48 = vld [vmem:[#allocation5 + $0x1cc] sm:$0xf]  ;;  %v1372_v52 = vld [vmem:[#allocation5 + $0xb8] sm:$0xf0] }
  0x46   :  { %765 = vmatpush.bf16.msrb.mxu0 %v1447_v51  ;;  %v1837_v51 = vld [vmem:[#allocation5 + $0xac] sm:$0xf]  ;;  %v1627_v53 = vor.u32 %v1903_v46, %v1626_v45  ;;  %v1628_v55 = vld [vmem:[#allocation5 + $0x2b8] sm:$0xf0]  ;;  %v1519_v56 = vor.u32 %v1873_v48, %v1516_v49  ;;  %v1891_v22 = vld [vmem:[#allocation5 + $0x254] sm:$0xf0] }
  0x47   :  { %820 = vmatpush.bf16.msra.mxu2 %v1467_v50  ;;  %v1647_v50 = vor.u32 %v1905_v42, %v1644_v43  ;;  %v1901_v54 = vld [vmem:[#allocation5 + $0x2ac] sm:$0xf]  ;;  %v1500_v62 = vld [vmem:[#allocation5 + $0x1b8] sm:$0xf0]  ;;  %v1546_v45 = vld [vmem:[#allocation5 + $0x208] sm:$0xf] }
  0x48   :  { %806 = vmatpush.bf16.msra.mxu3 %v1339_v47  ;;  %v1391_v47 = vor.u32 %v1841_v38, %v1388_v39  ;;  %v1869_v61 = vld [vmem:[#allocation5 + $0x1ac] sm:$0xf]  ;;  %v1356_v1 = vld [vmem:[#allocation5 + $0x98] sm:$0xf0]  ;;  %v1883_v46 = vld [vmem:[#allocation5 + $0x214] sm:$0xf0] }
  0x49   :  { %779 = vmatpush.bf16.msrb.mxu1 %v1575_v58  ;;  %v1899_v58 = vld [vmem:[#allocation5 + $0x294] sm:$0xf0]  ;;  %v1897_v3 = vld [vmem:[#allocation5 + $0x28c] sm:$0xf]  ;;  %v1612_v6 = vld [vmem:[#allocation5 + $0x298] sm:$0xf0]  ;;  %v1503_v7 = vor.u32 %v1869_v61, %v1500_v62 }
  0x4a   :  { %766 = vmatpush.bf16.msrb.mxu0 %v1431_v0  ;;  %v1833_v0 = vld [vmem:[#allocation5 + $0x8c] sm:$0xf]  ;;  %v1611_v2 = vor.u32 %v1899_v58, %v1610_v57  ;;  %v1615_v14 = vor.u32 %v1897_v3, %v1612_v6  ;;  %v1596_v19 = vld [vmem:[#allocation5 + $0x278] sm:$0xf0]  ;;  %v1922_v3 = vld [vmem:[#allocation7 + $0x30] sm:$0xff]  ;;  %s1248_s2 = sshll.u32 %s2071_s0, 4  ;;  %s1249_s2 = int_to_ptr.vmem [resolvable:$true] %s1248_s2 }
  0x4b   :  { %821 = vmatpush.bf16.msra.mxu2 %v1451_v63  ;;  %v1631_v63 = vor.u32 %v1901_v54, %v1628_v55  ;;  %v1359_v10 = vor.u32 %v1833_v0, %v1356_v1  ;;  %v1865_v11 = vld [vmem:[#allocation5 + $0x18c] sm:$0xf]  ;;  %v1324_v28 = vld [vmem:[#allocation5 + $0x58] sm:$0xf0]  ;;  %v1547_v55 = vor.u32 %v1883_v46, %v1546_v45  ;;  %v1934_v46 = vld [vmem:[#allocation7 + $0x90] sm:$0xff]  ;;  %s1250_s5 = sshll.u32 %s2137_s3, 4  ;;  %s1251_s5 = int_to_ptr.hbm [resolvable:$true] %s1250_s5 }
  0x4c   :  { %807 = vmatpush.bf16.msra.mxu3 %v1323_v59  ;;  %v1375_v59 = vor.u32 %v1837_v51, %v1372_v52  ;;  %v1829_v15 = vld [vmem:[#allocation5 + $0x6c] sm:$0xf]  ;;  %v1580_v31 = vld [vmem:[#allocation5 + $0x258] sm:$0xf0]  ;;  %s2072_s6 = smov 128   ;;  %s2073_s7 = smov 8  }
  0x4d   :  { %780 = vmatpush.bf16.msrb.mxu1 %v1559_v9  ;;  %v1895_v9 = vld [vmem:[#allocation5 + $0x274] sm:$0xf0]  ;;  %v1893_v18 = vld [vmem:[#allocation5 + $0x26c] sm:$0xf]  ;;  %v1564_v43 = vld [vmem:[#allocation5 + $0x238] sm:$0xf0] }
  0x4e   :  { %767 = vmatpush.bf16.msrb.mxu0 %v1415_v17  ;;  %v1595_v17 = vor.u32 %v1895_v9, %v1594_v8  ;;  %v1861_v24 = vld [vmem:[#allocation5 + $0x16c] sm:$0xf]  ;;  %v1599_v26 = vor.u32 %v1893_v18, %v1596_v19  ;;  %v1436_v49 = vld [vmem:[#allocation5 + $0x138] sm:$0xf0]  ;;  %v1918_v9 = vld [vmem:[#allocation7 + $0x10] sm:$0xff] }
  0x4f   :  { %822 = vmatpush.bf16.msra.mxu2 %v1435_v16  ;;  %v1340_v16 = vld [vmem:[#allocation5 + $0x78] sm:$0xf0]  ;;  %v1825_v27 = vld [vmem:[#allocation5 + $0x4c] sm:$0xf] }
  0x50   :  { %808 = vmatpush.bf16.msra.mxu3 %v1307_v12  ;;  %v1484_v12 = vld [vmem:[#allocation5 + $0x198] sm:$0xf0]  ;;  %v1343_v23 = vor.u32 %v1829_v15, %v1340_v16  ;;  %v1889_v30 = vld [vmem:[#allocation5 + $0x24c] sm:$0xf]  ;;  %v1327_v35 = vor.u32 %v1825_v27, %v1324_v28  ;;  %v1926_v16 = vld [vmem:[#allocation7 + $0x50] sm:$0xff] }
  0x51   :  { %781 = vmatpush.bf16.msrb.mxu1 %v1543_v25  ;;  %768 = vmatmul.bf16.vlgmr.msrb.gmra.mxu0 %v2111_v5  ;;  %v1487_v20 = vor.u32 %v1865_v11, %v1484_v12  ;;  %v1468_v25 = vld [vmem:[#allocation5 + $0x178] sm:$0xf0]  ;;  %v1857_v36 = vld [vmem:[#allocation5 + $0x14c] sm:$0xf]  ;;  %v1583_v38 = vor.u32 %v1889_v30, %v1580_v31  ;;  %v1928_v12 = vld [vmem:[#allocation7 + $0x60] sm:$0xff] }
  0x52   :  { %830 = vmatpush.bf16.msra.mxu0 %v1659_v21  ;;  %v1578_v21 = vld [vmem:[#allocation5 + $0x248] sm:$0xf]  ;;  %v1471_v32 = vor.u32 %v1861_v24, %v1468_v25  ;;  %v1821_v39 = vld [vmem:[#allocation5 + $0x2c] sm:$0xf]  ;;  %v1676_v51 = vld [vmem:[#allocation5 + $0x318] sm:$0xf0] }
  0x53   :  { %823 = vmatpush.bf16.msra.mxu2 %v1419_v34  ;;  %v1887_v34 = vld [vmem:[#allocation5 + $0x234] sm:$0xf0]  ;;  %v1885_v42 = vld [vmem:[#allocation5 + $0x22c] sm:$0xf]  ;;  %v1292_v54 = vld [vmem:[#allocation5 + $0x18] sm:$0xf0] }
  0x54   :  { %809 = vmatpush.bf16.msra.mxu3 %v1291_v29  ;;  %782 = vmatmul.bf16.vlgmr.msrb.gmra.mxu1 %v2107_v60  ;;  %v1579_v29 = vor.u32 %v1891_v22, %v1578_v21  ;;  %v1567_v52 = vor.u32 %v1885_v42, %v1564_v43  ;;  %v1548_v57 = vld [vmem:[#allocation5 + $0x218] sm:$0xf0]  ;;  %v1849_v62 = vld [vmem:[#allocation5 + $0x10c] sm:$0xf]  ;;  %v1938_v30 = vld [vmem:[#allocation7 + $0xb0] sm:$0xff] }
  0x55   :  { %851 = vmatpush.bf16.msra.mxu1 %v1675_v40  ;;  %v1308_v40 = vld [vmem:[#allocation5 + $0x38] sm:$0xf0]  ;;  %v1921_v6 = vld [vmem:[#allocation7 + $0x28] sm:$0xff]  ;;  %v1946_v43 = vld [vmem:[#allocation7 + $0xf0] sm:$0xff] }
  0x56   :  { %831 = vmatpush.bf16.msra.mxu0 %v1643_v41  ;;  %824 = vmatmul.bf16.vlgmr.msra.gmra.mxu2 %v2111_v5  ;;  %v1311_v48 = vor.u32 %v1821_v39, %v1308_v40  ;;  %v1923_v1 = vld [vmem:[#allocation7 + $0x38] sm:$0xff] }
  0x57   :  { %886 = vmatpush.bf16.msrb.mxu2 %v1663_v37  ;;  %810 = vmatmul.bf16.vlgmr.msra.gmra.mxu3 %v2109_v4  ;;  %v1452_v37 = vld [vmem:[#allocation5 + $0x158] sm:$0xf0] }
  0x58   :  { %858 = vmatpush.bf16.msrb.mxu3 %v1407_v33  ;;  %v1562_v33 = vld [vmem:[#allocation5 + $0x228] sm:$0xf]  ;;  %v1919_v8 = vld [vmem:[#allocation7 + $0x18] sm:$0xff] }
  0x59   :  { %872 = vmatpush.bf16.msrb.mxu1 %v1535_v44  ;;  %v1563_v41 = vor.u32 %v1887_v34, %v1562_v33  ;;  %v1455_v44 = vor.u32 %v1857_v36, %v1452_v37  ;;  %v1931_v11 = vld [vmem:[#allocation7 + $0x78] sm:$0xff]  ;;  %v1937_v33 = vld [vmem:[#allocation7 + $0xa8] sm:$0xff]  ;;  %v1936_v37 = vld [vmem:[#allocation7 + $0xa0] sm:$0xff] }
  0x5a   :  { %832 = vmatpush.bf16.msra.mxu0 %v1627_v53  ;;  %v1817_v53 = vld [vmem:[#allocation5 + $0xc] sm:$0xf]  ;;  %v1939_v25 = vld [vmem:[#allocation7 + $0xb8] sm:$0xff] }
  0x5b   :  { %887 = vmatpush.bf16.msrb.mxu2 %v1647_v50  ;;  %v1913_v50 = vld [vmem:[#allocation5 + $0x30c] sm:$0xf]  ;;  %v1295_v61 = vor.u32 %v1817_v53, %v1292_v54  ;;  %v1947_v39 = vld [vmem:[#allocation7 + $0xf8] sm:$0xff]  ;;  %v1944_v54 = vld [vmem:[#allocation7 + $0xe0] sm:$0xff] }
  0x5c   :  { %859 = vmatpush.bf16.msrb.mxu3 %v1391_v47  ;;  %v1853_v47 = vld [vmem:[#allocation5 + $0x12c] sm:$0xf]  ;;  %v1935_v40 = vld [vmem:[#allocation7 + $0x98] sm:$0xff] }
  0x5d   :  { %873 = vmatpush.bf16.msrb.mxu1 %v1519_v56  ;;  %v1881_v56 = vld [vmem:[#allocation5 + $0x20c] sm:$0xf]  ;;  %v1439_v58 = vor.u32 %v1853_v47, %v1436_v49 }
  0x5e   :  { %833 = vmatpush.bf16.msra.mxu0 %v1611_v2  ;;  %v1551_v0 = vor.u32 %v1881_v56, %v1548_v57  ;;  %v1932_v57 = vld [vmem:[#allocation7 + $0x80] sm:$0xff] }
  0x5f   :  { %888 = vmatpush.bf16.msrb.mxu2 %v1631_v63  ;;  %v1420_v63 = vld [vmem:[#allocation5 + $0x118] sm:$0xf0] }
  0x60   :  { %860 = vmatpush.bf16.msrb.mxu3 %v1375_v59  ;;  %v1679_v59 = vor.u32 %v1913_v50, %v1676_v51  ;;  %v1423_v2 = vor.u32 %v1849_v62, %v1420_v63  ;;  %v1933_v50 = vld [vmem:[#allocation7 + $0x88] sm:$0xff]  ;;  %v1943_v62 = vld [vmem:[#allocation7 + $0xd8] sm:$0xff] }
  0x61   :  { %874 = vmatpush.bf16.msrb.mxu1 %v1503_v7  ;;  %v1920_v7 = vld [vmem:[#allocation7 + $0x20] sm:$0xff] }
  0x62   :  { %834 = vmatpush.bf16.msra.mxu0 %v1595_v17 }
  0x63   :  { %889 = vmatpush.bf16.msrb.mxu2 %v1615_v14  ;;  %v1927_v14 = vld [vmem:[#allocation7 + $0x58] sm:$0xff] }
  0x64   :  { %861 = vmatpush.bf16.msrb.mxu3 %v1359_v10  ;;  %1682 = vmatmul.msk.bf16.vlgmr.msra.gmra.mxu1 %vm686_vm0, %v2103_v13  ;;  %v1917_v10 = vld [vmem:[#allocation7 + $0x8] sm:$0xff] }
  0x65   :  { %875 = vmatpush.bf16.msrb.mxu1 %v1487_v20  ;;  %v1925_v20 = vld [vmem:[#allocation7 + $0x48] sm:$0xff] }
  0x66   :  { %835 = vmatpush.bf16.msra.mxu0 %v1579_v29 }
  0x67   :  { %890 = vmatpush.bf16.msrb.mxu2 %v1599_v26  ;;  %v1924_v26 = vld [vmem:[#allocation7 + $0x40] sm:$0xff] }
  0x68   :  { %862 = vmatpush.bf16.msrb.mxu3 %v1343_v23 }
  0x69   :  { %876 = vmatpush.bf16.msrb.mxu1 %v1471_v32 }
  0x6a   :  { %836 = vmatpush.bf16.msra.mxu0 %v1563_v41 }
  0x6b   :  { %891 = vmatpush.bf16.msrb.mxu2 %v1583_v38 }
  0x6c   :  { %863 = vmatpush.bf16.msrb.mxu3 %v1327_v35 }
  0x6d   :  { %877 = vmatpush.bf16.msrb.mxu1 %v1455_v44 }
  0x6e   :  { %837 = vmatpush.bf16.msra.mxu0 %v1547_v55 }
  0x6f   :  { %892 = vmatpush.bf16.msrb.mxu2 %v1567_v52 }
  0x70   :  { %864 = vmatpush.bf16.msrb.mxu3 %v1311_v48  ;;  %v1945_v48 = vld [vmem:[#allocation7 + $0xe8] sm:$0xff] }
  0x71   :  { %878 = vmatpush.bf16.msrb.mxu1 %v1439_v58  ;;  %838 = vmatmul.bf16.vlgmr.msra.gmra.mxu0 %v2107_v60 }
  0x72   :  { %907 = vmatpush.bf16.msrb.mxu0 %v1679_v59 }
  0x73   :  { %893 = vmatpush.bf16.msrb.mxu2 %v1551_v0 }
  0x74   :  { %865 = vmatpush.bf16.msrb.mxu3 %v1295_v61 }
  0x75   :  { %879 = vmatpush.bf16.msrb.mxu1 %v1423_v2 }
  0x76   :  { %894 = vmatmul.bf16.vlgmr.msrb.gmra.mxu2 %v2107_v60  ;;  %1196 = vmatpush.bf16.msra.mxu0 %v1931_v11  ;;  %v1930_v60 = vld [vmem:[#allocation7 + $0x70] sm:$0xff] }
  0x77   :  { %866 = vmatmul.bf16.vlgmr.msrb.gmra.mxu3 %v2109_v4  ;;  %v1916_v4 = vld [vmem:[#allocation7] sm:$0xff]  ;;  %1224 = vmatpush.bf16.msra.mxu2 %v1947_v39 }
  0x78   :  { %1182 = vmatpush.bf16.msra.mxu3 %v1923_v1  ;;  %880 = vmatmul.bf16.vlgmr.msrb.gmra.mxu1 %v2111_v5  ;;  %v1929_v5 = vld [vmem:[#allocation7 + $0x68] sm:$0xff]  ;;  %v1942_v1 = vld [vmem:[#allocation7 + $0xd0] sm:$0xff] }
  0x79   :  { %1210 = vmatpush.bf16.msra.mxu1 %v1939_v25 }
  0x7a   :  { %1197 = vmatpush.bf16.msra.mxu0 %v1930_v60 }
  0x7b   :  { %1225 = vmatpush.bf16.msra.mxu2 %v1946_v43 }
  0x7c   :  { %1183 = vmatpush.bf16.msra.mxu3 %v1922_v3 }
  0x7d   :  { %1211 = vmatpush.bf16.msra.mxu1 %v1938_v30 }
  0x7e   :  { %1198 = vmatpush.bf16.msra.mxu0 %v1929_v5 }
  0x7f   :  { %1226 = vmatpush.bf16.msra.mxu2 %v1945_v48 }
  0x80   :  { %1184 = vmatpush.bf16.msra.mxu3 %v1921_v6  ;;  %v1941_v6 = vld [vmem:[#allocation7 + $0xc8] sm:$0xff] }
  0x81   :  { %1683 = vmatmul.msk.bf16.vlgmr.msrb.gmra.mxu0 %vm686_vm0, %v2103_v13  ;;  %1212 = vmatpush.bf16.msra.mxu1 %v1937_v33 }
  0x82   :  { %1199 = vmatpush.bf16.msra.mxu0 %v1928_v12 }
  0x83   :  { %1227 = vmatpush.bf16.msra.mxu2 %v1944_v54 }
  0x84   :  { %1185 = vmatpush.bf16.msra.mxu3 %v1920_v7 }
  0x85   :  { %1213 = vmatpush.bf16.msra.mxu1 %v1936_v37 }
  0x86   :  { %1200 = vmatpush.bf16.msra.mxu0 %v1927_v14 }
  0x87   :  { %1228 = vmatpush.bf16.msra.mxu2 %v1943_v62 }
  0x88   :  { %1186 = vmatpush.bf16.msra.mxu3 %v1919_v8  ;;  %v1940_v8 = vld [vmem:[#allocation7 + $0xc0] sm:$0xff] }
  0x89   :  { %1214 = vmatpush.bf16.msra.mxu1 %v1935_v40 }
  0x8a   :  { %1201 = vmatpush.bf16.msra.mxu0 %v1926_v16 }
  0x8b   :  { %1229 = vmatpush.bf16.msra.mxu2 %v1942_v1 }
  0x8c   :  { %1187 = vmatpush.bf16.msra.mxu3 %v1918_v9 }
  0x8d   :  { %1215 = vmatpush.bf16.msra.mxu1 %v1934_v46 }
  0x8e   :  { %1202 = vmatpush.bf16.msra.mxu0 %v1925_v20 }
  0x8f   :  { %1230 = vmatpush.bf16.msra.mxu2 %v1941_v6 }
  0x90   :  { %1188 = vmatpush.bf16.msra.mxu3 %v1917_v10 }
  0x91   :  { %1216 = vmatpush.bf16.msra.mxu1 %v1933_v50 }
  0x92   :  { %1203 = vmatpush.bf16.msra.mxu0 %v1924_v26 }
  0x93   :  { %1231 = vmatpush.bf16.msra.mxu2 %v1940_v8 }
  0x94   :  { %1189 = vmatpush.bf16.msra.mxu3 %v1916_v4 }
  0x95   :  { %1217 = vmatpush.bf16.msra.mxu1 %v1932_v57 }
  0xa4   :  { %v741_v17 = vpop.f32.mrf.mxu3 }
  0xac   :  { %v743_v31 = vpop.f32.mrf.mxu3 }
  0xae   :  { %v699_v13 = vpop.f32.mrf.mxu0 }
  0xb1   :  { %v713_v15 = vpop.f32.mrf.mxu1 }
  0xb2   :  { %v714_v19 = vadd.f32 %v713_v15, %v699_v13 }
  0xb5   :  { %v727_v18 = vpop.f32.mrf.mxu2 }
  0xb6   :  { %v701_v21 = vpop.f32.mrf.mxu0  ;;  %v728_v23 = vadd.f32 %v727_v18, %v714_v19 }
  0xb8   :  { %v742_v28 = vadd.f32 %v741_v17, %v728_v23 }
  0xb9   :  { %v715_v22 = vpop.f32.mrf.mxu1 }
  0xba   :  { %v716_v24 = vadd.f32 %v715_v22, %v701_v21  ;;  %v914_v34 = vmul.f32 %v742_v28, %v742_v28  ;;  %v755_v38 = vpop.f32.mrf.mxu3 }
  0xbd   :  { %v729_v27 = vpop.f32.mrf.mxu2 }
  0xbe   :  { %v730_v29 = vadd.f32 %v729_v27, %v716_v24 }
  0xc0   :  { %v744_v32 = vadd.f32 %v743_v31, %v730_v29 }
  0xc2   :  { %v918_v35 = vmul.f32 %v744_v32, %v744_v32  ;;  %v757_v49 = vpop.f32.mrf.mxu3 }
  0xc4   :  { %v922_v36 = vpack.c.bf16 %v918_v35, %v914_v34 }
  0xc5   :  { %v797_v45 = vpop.f32.mrf.mxu2 }
  0xc6   :  { %1190 = vmatmul.bf16.vlgmr.msra.gmra.mxu3 %v922_v36 }
  0xcd   :  { %v799_v58 = vpop.f32.mrf.mxu2 }
  0xce   :  { %v769_v41 = vpop.f32.mrf.mxu0 }
  0xcf   :  { %v770_v42 = vadd.f32 %v769_v41, %v755_v38 }
  0xd1   :  { %v783_v44 = vpop.f32.mrf.mxu1 }
  0xd2   :  { %v784_v47 = vadd.f32 %v783_v44, %v770_v42 }
  0xd4   :  { %v798_v52 = vadd.f32 %v797_v45, %v784_v47 }
  0xd6   :  { %v771_v51 = vpop.f32.mrf.mxu0  ;;  %v915_v59 = vmul.f32 %v798_v52, %v798_v52 }
  0xd7   :  { %v772_v53 = vadd.f32 %v771_v51, %v757_v49 }
  0xd9   :  { %v785_v55 = vpop.f32.mrf.mxu1  ;;  %v825_v7 = vpop.f32.mrf.mxu2 }
  0xda   :  { %v786_v56 = vadd.f32 %v785_v55, %v772_v53  ;;  %v811_v3 = vpop.f32.mrf.mxu3 }
  0xdb   :  { %v826_v60 = vadd.f32 %v825_v7, %v811_v3 }
  0xdc   :  { %v800_v61 = vadd.f32 %v799_v58, %v786_v56 }
  0xde   :  { %v919_v63 = vmul.f32 %v800_v61, %v800_v61 }
  0xe0   :  { %v923_v0 = vpack.c.bf16 %v919_v63, %v915_v59 }
  0xe1   :  { %v853_v2 = vpop.f32.mrf.mxu1  ;;  %v827_v4 = vpop.f32.mrf.mxu2 }
  0xe2   :  { %1204 = vmatmul.bf16.vlgmr.msra.gmra.mxu0 %v923_v0  ;;  %v813_v10 = vpop.f32.mrf.mxu3 }
  0xe3   :  { %v828_v12 = vadd.f32 %v827_v4, %v813_v10 }
  0xe9   :  { %v855_v9 = vpop.f32.mrf.mxu1 }
  0xee   :  { %v839_v11 = vpop.f32.mrf.mxu0 }
  0xef   :  { %v840_v5 = vadd.f32 %v839_v11, %v826_v60 }
  0xf1   :  { %v854_v16 = vadd.f32 %v853_v2, %v840_v5 }
  0xf3   :  { %v916_v20 = vmul.f32 %v854_v16, %v854_v16 }
  0xf5   :  { %v881_v14 = vpop.f32.mrf.mxu1 }
  0xf6   :  { %v841_v15 = vpop.f32.mrf.mxu0 }
  0xf7   :  { %v842_v17 = vadd.f32 %v841_v15, %v828_v12 }
  0xf9   :  { %v895_v18 = vpop.f32.mrf.mxu2  ;;  %v856_v19 = vadd.f32 %v855_v9, %v842_v17 }
  0xfa   :  { %v867_v13 = vpop.f32.mrf.mxu3 }
  0xfb   :  { %v920_v21 = vmul.f32 %v856_v19, %v856_v19  ;;  %v882_v22 = vadd.f32 %v881_v14, %v867_v13 }
  0xfd   :  { %v924_v23 = vpack.c.bf16 %v920_v21, %v916_v20  ;;  %v883_v26 = vpop.f32.mrf.mxu1  ;;  %v896_v27 = vadd.f32 %v895_v18, %v882_v22 }
  0xfe   :  { %v909_v25 = vpop.f32.mrf.mxu0 }
  0xff   :  { %1218 = vmatmul.bf16.vlgmr.msra.gmra.mxu1 %v924_v23  ;;  %v910_v30 = vadd.f32 %v909_v25, %v896_v27 }
 0x101   :  { %v897_v29 = vpop.f32.mrf.mxu2  ;;  %v917_v34 = vmul.f32 %v910_v30, %v910_v30 }
 0x102   :  { %v869_v24 = vpop.f32.mrf.mxu3 }
 0x103   :  { %v884_v28 = vadd.f32 %v883_v26, %v869_v24 }
 0x105   :  { %v898_v31 = vadd.f32 %v897_v29, %v884_v28 }
 0x106   :  { %v911_v32 = vpop.f32.mrf.mxu0 }
 0x107   :  { %v912_v33 = vadd.f32 %v911_v32, %v898_v31 }
 0x109   :  { %v921_v35 = vmul.f32 %v912_v33, %v912_v33 }
 0x10b   :  { %v925_v36 = vpack.c.bf16 %v921_v35, %v917_v34 }
 0x10d   :  { %1232 = vmatmul.bf16.vlgmr.msra.gmra.mxu2 %v925_v36 }
 0x149   :  { %v1191_v37 = vpop.f32.mrf.mxu3 }
 0x14a   :  { %v1192_v40 = vadd.f32 1e-06, %v1191_v37 }
 0x151   :  { %v1193_v43 = vpop.f32.mrf.mxu3 }
 0x152   :  { %v1194_v47 = vadd.f32 1e-06, %v1193_v43 }
 0x15f   :  { %v1205_v38 = vpop.f32.mrf.mxu0 }
 0x160   :  { %v1206_v41 = vadd.f32 %v1205_v38, %v1192_v40 }
 0x167   :  { %v1207_v46 = vpop.f32.mrf.mxu0 }
 0x168   :  { %v1208_v49 = vadd.f32 %v1207_v46, %v1194_v47 }
 0x17c   :  { %v1219_v39 = vpop.f32.mrf.mxu1 }
 0x17d   :  { %v1220_v42 = vadd.f32 %v1219_v39, %v1206_v41 }
 0x184   :  { %v1221_v48 = vpop.f32.mrf.mxu1 }
 0x185   :  { %v1222_v50 = vadd.f32 %v1221_v48, %v1208_v49 }
 0x190   :  { %v1233_v44 = vpop.f32.mrf.mxu2 }
 0x191   :  { %v1234_v45 = vadd.f32 %v1233_v44, %v1220_v42 }
 0x193   :  { %1958 = vlog2.f32 %v1234_v45 }
 0x198   :  { %v1235_v51 = vpop.f32.mrf.mxu2 }
 0x199   :  { %v1959_v52 = vpop.eup %1958  ;;  %v1236_v53 = vadd.f32 %v1235_v51, %v1222_v50 }
 0x19a   :  { %v1239_v54 = vmul.f32 0.6931472, %v1959_v52 }
 0x19b   :  { %1960 = vlog2.f32 %v1236_v53 }
 0x19c   :  { %1242 = vst [vmem:[#allocation8] sm:$0xff] %v1239_v54 }
 0x1a1   :  { %v1961_v55 = vpop.eup %1960 }
 0x1a2   :  { %v1241_v56 = vmul.f32 0.6931472, %v1961_v55 }
 0x1a4   :  { %1243 = vst [vmem:[#allocation8 + $0x8] sm:$0xff] %v1241_v56 }
 0x1a5   :  { %1256 = dma.vmem_to_hbm [thread:$0]  %s1249_s2, 256, %s1251_s5, [#allocation4], %s2072_s6, %s2072_s6, %s2073_s7  }
 0x1a6   :  { %2062 = dma.done.wait [#allocation4], 256  }
 0x1a7   :  { %2063 = vsyncadd [#allocation4], 4294967040 }
 0x1a8   :  { %1261 = vsyncpa [#allocation3], 1 }
 0x1a9   :  { %1262 = vsyncpa [#allocation6], 1 }
 0x1aa   :  { %1263 = vsyncpa [#allocation4], 1 }

</bundles_post_ra>
